<compile_context>
chip_gen: v6e
topology: v6e:2x2x1
jax: 0.10.0
libtpu: 0.0.40
codegen_flags: <defaults>
</compile_context>

<pallas_src>
import math

import jax
import jax.numpy as jnp
from jax.experimental import pallas as pl
from jax.experimental.pallas import tpu as pltpu

_VMEM_LIMIT = 48 * 1024 * 1024  # headroom under v7x's 64 MiB physical VMEM


def _cparams(dims):
    return pltpu.CompilerParams(
        dimension_semantics=dims, vmem_limit_bytes=_VMEM_LIMIT
    )


def _round_up(v, m=128):
    return ((v + m - 1) // m) * m


def _pick_tile(dim, candidates):
    """Largest candidate that divides `dim`, else the full dim."""
    for c in candidates:
        if c <= dim and dim % c == 0:
            return c
    return dim


# ----------------------------------------------------------------------------
# Pallas tiled matmul kernel:  out = relu?( X @ W + b )
#   grid = (Mb, Nb[, Kb])  with K innermost; M/N "parallel" (megacore), K "arbitrary".
#   bf16 operands, f32 accumulation, f32 epilogue. No-K-split fast path avoids the
#   accumulator scratch and the init/finalize pl.when.
# ----------------------------------------------------------------------------
def _make_matmul_kernel(relu, multi_k):
    if multi_k:
        def kernel(x_ref, w_ref, b_ref, o_ref, acc_ref):
            k = pl.program_id(2)

            @pl.when(k == 0)
            def _():
                acc_ref[...] = jnp.zeros_like(acc_ref)

            acc_ref[...] += jnp.dot(
                x_ref[...], w_ref[...], preferred_element_type=jnp.float32
            )

            @pl.when(k == pl.num_programs(2) - 1)
            def _():
                r = acc_ref[...] + b_ref[...]
                if relu:
                    r = jnp.maximum(r, 0.0)
                o_ref[...] = r.astype(o_ref.dtype)
    else:
        def kernel(x_ref, w_ref, b_ref, o_ref):
            r = jnp.dot(
                x_ref[...], w_ref[...], preferred_element_type=jnp.float32
            ) + b_ref[...]
            if relu:
                r = jnp.maximum(r, 0.0)
            o_ref[...] = r.astype(o_ref.dtype)

    return kernel


def matmul_bias(x, w, b, relu, out_dtype=jnp.bfloat16):
    """x: (M, K), w: (K, N), b: (1, N) f32 -> (M, N) with fused bias (+ ReLU)."""
    M, K = x.shape
    K2, N = w.shape
    assert K == K2
    x = x.astype(jnp.bfloat16)
    w = w.astype(jnp.bfloat16)
    b = b.astype(jnp.float32)

    tm = _pick_tile(M, (512, 256, 128))
    tn = _pick_tile(N, (512, 256, 128))
    tk = _pick_tile(K, (512, 384, 256, 128))
    mb, nb, kb = M // tm, N // tn, K // tk

    if kb == 1:
        grid_spec = pltpu.PrefetchScalarGridSpec(
            num_scalar_prefetch=0,
            grid=(mb, nb),
            in_specs=[
                pl.BlockSpec((tm, tk), lambda i, j: (i, 0)),
                pl.BlockSpec((tk, tn), lambda i, j: (0, j)),
                pl.BlockSpec((1, tn), lambda i, j: (0, j)),
            ],
            out_specs=pl.BlockSpec((tm, tn), lambda i, j: (i, j)),
        )
        dims = ("parallel", "parallel")
        kernel = _make_matmul_kernel(relu, multi_k=False)
    else:
        grid_spec = pltpu.PrefetchScalarGridSpec(
            num_scalar_prefetch=0,
            grid=(mb, nb, kb),
            in_specs=[
                pl.BlockSpec((tm, tk), lambda i, j, k: (i, k)),
                pl.BlockSpec((tk, tn), lambda i, j, k: (k, j)),
                pl.BlockSpec((1, tn), lambda i, j, k: (0, j)),
            ],
            out_specs=pl.BlockSpec((tm, tn), lambda i, j, k: (i, j)),
            scratch_shapes=[pltpu.VMEM((tm, tn), jnp.float32)],
        )
        dims = ("parallel", "parallel", "arbitrary")
        kernel = _make_matmul_kernel(relu, multi_k=True)

    return pl.pallas_call(
        kernel,
        out_shape=jax.ShapeDtypeStruct((M, N), out_dtype),
        grid_spec=grid_spec,
        compiler_params=_cparams(dims),
    )(x, w, b)


# ----------------------------------------------------------------------------
# Direct 3x3 "valid" conv kernel (im2col-free): grid over images; inside the kernel a
# statically unrolled row-block loop DMAs halo'd (th+2, Wp, C) windows from HBM into a
# 2-slot VMEM buffer (double-buffered: prefetch block i+1 while computing block i) and
# accumulates the 9 taps as 9 MXU dots.  Bias + ReLU fused.  Lane-dense output.
# ----------------------------------------------------------------------------
def _pick_rows(ho, wo):
    for cand in (64, 32, 16, 8, 4, 2, 1):
        if cand <= ho and ho % cand == 0 and cand * wo <= 2048:
            return cand
    return ho


def _conv3x3_direct(xp, w9, bp, relu):
    """xp: (N, Ho+2, Wo+2, C) spatially padded; w9: (9, C, Cout); bp: (1, Cout) f32."""
    N, Hp, Wp, C = xp.shape
    Ho, Wo = Hp - 2, Wp - 2
    cout = w9.shape[-1]
    th = _pick_rows(Ho, Wo)
    nblk = Ho // th

    x_rows = xp.astype(jnp.bfloat16).reshape(N * Hp, Wp, C)
    w9 = w9.astype(jnp.bfloat16)
    bp = bp.astype(jnp.float32)

    def kernel(x_hbm, w_ref, b_ref, o_ref, xbuf, sem):
        n = pl.program_id(0)

        def make_cp(i, slot):
            row0 = n * Hp + i * th
            return pltpu.make_async_copy(
                x_hbm.at[pl.ds(row0, th + 2)], xbuf.at[slot], sem.at[slot]
            )

        pending = make_cp(0, 0)
        pending.start()
        for i in range(nblk):                 # static unroll: nblk is small at these shapes
            slot = i % 2
            nxt = None
            if i + 1 < nblk:
                nxt = make_cp(i + 1, 1 - slot)
                nxt.start()                   # prefetch next row block
            pending.wait()
            acc = jnp.zeros((th * Wo, cout), jnp.float32)
            for t in range(9):
                dy, dx = t // 3, t % 3
                xt = xbuf[slot, dy:dy + th, dx:dx + Wo, :].reshape(th * Wo, C)
                acc = acc + jnp.dot(xt, w_ref[t], preferred_element_type=jnp.float32)
            r = acc + b_ref[...]
            if relu:
                r = jnp.maximum(r, 0.0)
            o_ref[i * th:(i + 1) * th] = r.reshape(th, Wo, cout).astype(o_ref.dtype)
            pending = nxt

    out = pl.pallas_call(
        kernel,
        out_shape=jax.ShapeDtypeStruct((N, Ho, Wo, cout), jnp.bfloat16),
        grid_spec=pltpu.PrefetchScalarGridSpec(
            num_scalar_prefetch=0,
            grid=(N,),
            in_specs=[
                pl.BlockSpec(memory_space=pl.ANY),                # rows stay in HBM
                pl.BlockSpec((9, C, cout), lambda n: (0, 0, 0)),  # weights resident
                pl.BlockSpec((1, cout), lambda n: (0, 0)),
            ],
            out_specs=pl.BlockSpec((None, Ho, Wo, cout), lambda n: (n, 0, 0, 0)),
            scratch_shapes=[
                pltpu.VMEM((2, th + 2, Wp, C), jnp.bfloat16),
                pltpu.SemaphoreType.DMA((2,)),
            ],
        ),
        compiler_params=_cparams(("parallel",)),
    )(x_rows, w9, bp)
    return out


def conv3x3_valid(xp, w9, bp, relu):
    """VALID 3x3 conv on an already spatially padded NHWC input."""
    N, Hp, Wp, C = xp.shape
    Ho, Wo = Hp - 2, Wp - 2
    cout = w9.shape[-1]
    out_block_bytes = Ho * Wo * cout * 2
    if (C % 128 == 0 and Wo % 8 == 0 and cout <= 512
            and out_block_bytes <= 8 * 1024 * 1024):
        return _conv3x3_direct(xp, w9, bp, relu)
    # Fallback (3-channel stem / tiny late layers): materialized im2col + tiled matmul.
    patches = jnp.concatenate(
        [xp[:, dy:dy + Ho, dx:dx + Wo, :] for dy in range(3) for dx in range(3)],
        axis=-1,
    )  # (N, Ho, Wo, 9*C), ordering (dy, dx, cin)
    out = matmul_bias(
        patches.reshape(N * Ho * Wo, 9 * C), w9.reshape(9 * C, cout), bp, relu
    )
    return out.reshape(N, Ho, Wo, cout)


# ----------------------------------------------------------------------------
# Weight prep: pad Cin up to the activation's (lane-padded) channel count and Cout up
# to a multiple of 128 with zeros -> lane-dense, numerically exact.
# ----------------------------------------------------------------------------
def _prep_conv_w(w_oihw, b, act_c):
    cout, cin = w_oihw.shape[0], w_oihw.shape[1]
    cout_p = _round_up(cout, 128)
    w = jnp.pad(w_oihw, ((0, cout_p - cout), (0, act_c - cin), (0, 0), (0, 0)))
    w9 = jnp.transpose(w, (2, 3, 1, 0)).reshape(9, act_c, cout_p)  # (tap=3*dy+dx, cin, cout)
    bp = jnp.pad(b, (0, cout_p - cout)).reshape(1, cout_p).astype(jnp.float32)
    return w9, bp


def conv3x3_same(x, w_oihw, b, relu):
    """Conv2d(k=3, stride=1, padding=1) + optional ReLU (PyTorch OIHW weights)."""
    xp = jnp.pad(x, ((0, 0), (1, 1), (1, 1), (0, 0)))
    w9, bp = _prep_conv_w(w_oihw, b, x.shape[-1])
    return conv3x3_valid(xp, w9, bp, relu)


def conv_transpose3x3_s2(x, w_iohw, b, relu):
    """ConvTranspose2d(k=3, s=2, p=1, output_padding=1) + optional ReLU.

    Sub-pixel decomposition (exact): with the flipped, in/out-swapped kernel W[dy,dx],
      out[2a  ,2b  ] = x[a,b]W[1,1]
      out[2a  ,2b+1] = x[a,b]W[1,0] + x[a,b+1]W[1,2]
      out[2a+1,2b  ] = x[a,b]W[0,1] + x[a+1,b]W[2,1]
      out[2a+1,2b+1] = x[a,b]W[0,0] + x[a,b+1]W[0,2] + x[a+1,b]W[2,0] + x[a+1,b+1]W[2,2]
    (avg 2.25 taps/pixel vs 9 on a zero-inserted input -> ~4x fewer MACs, no 4x-inflated
    activation ever written to HBM).  Each parity class is im2col + tiled MXU matmul.
    """
    N, H, W, C = x.shape
    w_conv = jnp.transpose(w_iohw, (1, 0, 2, 3))[:, :, ::-1, ::-1]  # (Cout, Cin, 3, 3)
    w9, bp = _prep_conv_w(w_conv, b, C)    # taps index the flipped kernel: tap = 3*dy+dx
    cout = w9.shape[-1]

    xb = x.astype(jnp.bfloat16)
    xp = jnp.pad(xb, ((0, 0), (0, 1), (0, 1), (0, 0)))   # +1 row/col at the high end
    x00 = xb
    x01 = xp[:, :H, 1:1 + W, :]        # x[a, b+1]
    x10 = xp[:, 1:1 + H, :W, :]        # x[a+1, b]
    x11 = xp[:, 1:1 + H, 1:1 + W, :]   # x[a+1, b+1]

    M = N * H * W

    def parity(slices, taps):
        xm = jnp.concatenate([s.reshape(M, C) for s in slices], axis=-1)
        wm = jnp.concatenate([w9[t] for t in taps], axis=0)
        return matmul_bias(xm, wm, bp, relu).reshape(N, H, W, cout)

    o_ee = parity([x00], [4])
    o_eo = parity([x00, x01], [3, 5])
    o_oe = parity([x00, x10], [1, 7])
    o_oo = parity([x00, x01, x10, x11], [0, 2, 6, 8])

    even = jnp.stack([o_ee, o_eo], axis=3).reshape(N, H, 2 * W, cout)
    odd = jnp.stack([o_oe, o_oo], axis=3).reshape(N, H, 2 * W, cout)
    return jnp.stack([even, odd], axis=2).reshape(N, 2 * H, 2 * W, cout)


def conv1x1(x, w_oi, b, relu, out_dtype=jnp.bfloat16):
    """1x1 conv (used for the final ConvTranspose2d with kernel_size=1)."""
    N, H, W, Cp = x.shape
    cout, cin = w_oi.shape
    cout_p = _round_up(cout, 128)
    w2 = jnp.transpose(jnp.pad(w_oi, ((0, cout_p - cout), (0, Cp - cin))))  # (Cp, cout_p)
    bp = jnp.pad(b, (0, cout_p - cout)).reshape(1, cout_p).astype(jnp.float32)
    out = matmul_bias(x.reshape(N * H * W, Cp), w2, bp, relu, out_dtype=out_dtype)
    return out.reshape(N, H, W, cout_p)


# ----------------------------------------------------------------------------
# MaxPool2d(2, 2): free row-major reshape to (N*Ho, 2, Wo, 2C), lane-dense Pallas kernel
# with a row-block grid.  No transpose / relayout, no extra HBM round trip.
# ----------------------------------------------------------------------------
def _pick_pool_rows(rows, wo, c, itemsize):
    row_bytes = 2 * wo * 2 * c * itemsize
    for cand in (256, 128, 64, 32, 16, 8, 4, 2, 1):
        if cand <= rows and rows % cand == 0 and cand * row_bytes <= (1 << 20):
            return cand
    return rows


def maxpool2x2(x):
    N, H, W, C = x.shape
    Ho, Wo = H // 2, W // 2
    xr = x.reshape(N * Ho, 2, Wo, 2 * C)  # pure row-major reshape (no copy)
    R = N * Ho
    tr = _pick_pool_rows(R, Wo, C, x.dtype.itemsize)

    def kernel(x_ref, o_ref):
        v = jnp.maximum(x_ref[:, 0], x_ref[:, 1])          # vertical 2-max
        o_ref[...] = jnp.maximum(v[..., :C], v[..., C:])   # horizontal 2-max (lane-aligned)

    out = pl.pallas_call(
        kernel,
        out_shape=jax.ShapeDtypeStruct((R, Wo, C), x.dtype),
        grid_spec=pltpu.PrefetchScalarGridSpec(
            num_scalar_prefetch=0,
            grid=(R // tr,),
            in_specs=[pl.BlockSpec((tr, 2, Wo, 2 * C), lambda r: (r, 0, 0, 0))],
            out_specs=pl.BlockSpec((tr, Wo, C), lambda r: (r, 0, 0)),
        ),
        compiler_params=_cparams(("parallel",)),
    )(xr)
    return out.reshape(N, Ho, Wo, C)


# ----------------------------------------------------------------------------
# SegNet32 parameters (deterministic synthetic init; channel widths scaled /8 for the demo)
# ----------------------------------------------------------------------------
VGG_CFG = [8, 8, "M", 16, 16, "M", 32, 32, 32, "M", 64, 64, 64, "M", 64, 64, 64, "M"]
DECODER_CFG = [64, 64, 32, 16, 8, 4]  # /8 of [512, 512, 256, 128, 64, 32]


def _init_conv(key, cout, cin, k):
    k1, k2 = jax.random.split(key)
    w = jax.random.normal(k1, (cout, cin, k, k), jnp.float32) * (
        1.0 / math.sqrt(cin * k * k)
    )
    b = jax.random.normal(k2, (cout,), jnp.float32) * 0.01
    return w, b


def _init_deconv(key, cin, cout, k):
    k1, k2 = jax.random.split(key)
    w = jax.random.normal(k1, (cin, cout, k, k), jnp.float32) * (
        1.0 / math.sqrt(cout * k * k)
    )
    b = jax.random.normal(k2, (cout,), jnp.float32) * 0.01
    return w, b


def init_params(key, num_class):
    # TODO(synk): torchvision vgg16(pretrained=True) weights cannot be loaded;
    # deterministic random init is used instead (same layer structure).
    params = {"num_class": num_class}
    backbone = []
    cin = 3
    for v in VGG_CFG:
        if v == "M":
            backbone.append("M")
        else:
            key, sub = jax.random.split(key)
            backbone.append(_init_conv(sub, v, cin, 3))
            cin = v
    params["backbone"] = backbone

    deconvs = []
    for i in range(5):
        key, sub = jax.random.split(key)
        deconvs.append(_init_deconv(sub, DECODER_CFG[i], DECODER_CFG[i + 1], 3))
    params["deconvs"] = deconvs

    key, sub = jax.random.split(key)
    params["final"] = _init_deconv(sub, DECODER_CFG[-1], num_class, 1)
    return params


# ----------------------------------------------------------------------------
# Forward pass (matches SegNet32.forward: backbone -> conv_block)
# ----------------------------------------------------------------------------
def segnet32_forward(x_nchw, params):
    x = jnp.transpose(x_nchw, (0, 2, 3, 1)).astype(jnp.bfloat16)  # NCHW -> NHWC, bf16

    # backbone = vgg16.features: [Conv2d(3x3, pad=1) + ReLU]* with 5x MaxPool2d(2, 2)
    for layer in params["backbone"]:
        if layer == "M":
            x = maxpool2x2(x)
        else:
            w, b = layer
            x = conv3x3_same(x, w, b, relu=True)

    # conv_block: 5x [ConvTranspose2d(k=3, s=2, p=1, output_padding=1) + ReLU]
    for w, b in params["deconvs"]:
        x = conv_transpose3x3_s2(x, w, b, relu=True)

    # final ConvTranspose2d(.., num_class, kernel_size=1)  (== 1x1 conv, no ReLU)
    w, b = params["final"]
    w_oi = jnp.transpose(w[:, :, 0, 0])  # (num_class, cin)
    x = conv1x1(x, w_oi, b, relu=False, out_dtype=jnp.float32)

    x = x[..., : params["num_class"]]        # drop lane-padding channels
    return jnp.transpose(x, (0, 3, 1, 2))    # NHWC -> NCHW


# ----------------------------------------------------------------------------
if __name__ == "__main__":
    num_class = 7
    root = jax.random.PRNGKey(0)
    k_in, k_par = jax.random.split(root)

    x = jax.random.normal(k_in, (2, 3, 64, 64), jnp.float32)  # NCHW input
    params = init_params(k_par, num_class)

    out = segnet32_forward(x, params)
    out = jax.block_until_ready(out)

    assert out.shape == (2, num_class, 64, 64), out.shape
    assert out.dtype == jnp.float32
    assert bool(jnp.all(jnp.isfinite(out)))
    print("KERNEL_OK")
</pallas_src>

<mosaic_0001>
module attributes {stable_mosaic.version = 11 : i64} {
  func.func @kernel(%arg0: i32, %arg1: i32, %arg2: memref<512x27xbf16, #tpu.memory_space<vmem>>, %arg3: memref<27x128xbf16, #tpu.memory_space<vmem>>, %arg4: memref<1x128xf32, #tpu.memory_space<vmem>>, %arg5: memref<512x128xbf16, #tpu.memory_space<vmem>>) attributes {dimension_semantics = [#tpu.dimension_semantics<parallel>, #tpu.dimension_semantics<parallel>], iteration_bounds = array<i64: 16, 1>, scalar_prefetch = 0 : i64, scratch_operands = 0 : i64, tpu.core_type = #tpu.core_type<tc>, window_params = [{transform_indices = @transform_0, window_bounds = array<i64: 512, 27>}, {transform_indices = @transform_1, window_bounds = array<i64: 27, 128>}, {transform_indices = @transform_2, window_bounds = array<i64: 1, 128>}, {transform_indices = @transform_3, window_bounds = array<i64: 512, 128>}]} {
    %c0 = arith.constant 0 : index
    %c0_0 = arith.constant 0 : index
    %0 = vector.load %arg2[%c0, %c0_0] : memref<512x27xbf16, #tpu.memory_space<vmem>>, vector<512x27xbf16>
    %c0_1 = arith.constant 0 : index
    %c0_2 = arith.constant 0 : index
    %1 = vector.load %arg3[%c0_1, %c0_2] : memref<27x128xbf16, #tpu.memory_space<vmem>>, vector<27x128xbf16>
    %cst = arith.constant dense<0.000000e+00> : vector<512x128xf32>
    %2 = tpu.matmul %0, %1, %cst {dimension_numbers = #tpu.dot_dimension_numbers<[1], [0], [0], [1], [0, 0, 1, 1], [], []>} : vector<512x27xbf16>, vector<27x128xbf16>, vector<512x128xf32> -> vector<512x128xf32>
    %c0_3 = arith.constant 0 : index
    %c0_4 = arith.constant 0 : index
    %3 = vector.load %arg4[%c0_3, %c0_4] : memref<1x128xf32, #tpu.memory_space<vmem>>, vector<1x128xf32>
    %4 = vector.broadcast %3 : vector<1x128xf32> to vector<512x128xf32>
    %5 = arith.addf %2, %4 : vector<512x128xf32>
    %cst_5 = arith.constant 0.000000e+00 : f32
    %6 = vector.broadcast %cst_5 : f32 to vector<512x128xf32>
    %7 = arith.maximumf %5, %6 : vector<512x128xf32>
    %8 = arith.truncf %7 : vector<512x128xf32> to vector<512x128xbf16>
    %c0_6 = arith.constant 0 : index
    %c0_7 = arith.constant 0 : index
    %9 = vector.load %arg5[%c0_6, %c0_7] : memref<512x128xbf16, #tpu.memory_space<vmem>>, vector<512x128xbf16>
    tpu.vector_store %arg5[%c0_6, %c0_7], %8 {strides = array<i32>} : memref<512x128xbf16, #tpu.memory_space<vmem>>, vector<512x128xbf16>,
    return
  }
  func.func @transform_0(%arg0: i32, %arg1: i32) -> (i32, i32) {
    %c0_i32 = arith.constant 0 : i32
    %c0_i32_0 = arith.constant 0 : i32
    return %arg0, %c0_i32 : i32, i32
  }
  func.func @transform_1(%arg0: i32, %arg1: i32) -> (i32, i32) {
    %c0_i32 = arith.constant 0 : i32
    %c0_i32_0 = arith.constant 0 : i32
    return %c0_i32, %arg1 : i32, i32
  }
  func.func @transform_2(%arg0: i32, %arg1: i32) -> (i32, i32) {
    %c0_i32 = arith.constant 0 : i32
    %c0_i32_0 = arith.constant 0 : i32
    return %c0_i32, %arg1 : i32, i32
  }
  func.func @transform_3(%arg0: i32, %arg1: i32) -> (i32, i32) {
    %c0_i32 = arith.constant 0 : i32
    return %arg0, %arg1 : i32, i32
  }
}

</mosaic_0001>

<bundles_post_ra>
// kernel: tpu_custom_call.1
= control target key start
LH: loop header
LB: loop body
LE: loop exit
PB: predicated region body
PF: predicated region fallthrough
CT: control target
= control target key end

     0   :  { %8 = vsyncpa [#allocation3], 0  ;;  %s2350_s0 = inlined_call_operand.vmem [shape: bf16[8192,27], index: 0, kind: input, shape index: {}]   ;;  %s2351_s1 = inlined_call_operand.vmem [shape: bf16[27,128], index: 1, kind: input, shape index: {}]   ;;  %s2352_s2 = inlined_call_operand.vmem [shape: f32[1,128], index: 2, kind: input, shape index: {}]   ;;  %s2353_s3 = inlined_call_operand.hbm [shape: bf16[8192,128], index: 3, kind: output, shape index: {}]  }
   0x1   :  { %10 = vsyncpa [#allocation3 + $0x1], 0  ;;  %s2057_s12 = smov 0   ;;  %s2059_s13 = smov 0  }
   0x2   :  { %s2061_s14 = smov 0   ;;  %s2063_s15 = smov 0  }
   0x3   :  { %s2065_s16 = smov 0   ;;  %s2067_s17 = smov 0  }
   0x4 LB: > { %s1355_s18 = sadd.s32 4294967295, %s2031_s17   ;;  %s1356_s19 = sadd.s32 4294967294, %s2031_s17   ;;  %s2031_s17 = sphi %s2067_s17, %s16_s17   ;;  %s2027_s16 = sphi %s2065_s16, %s2360_s16   ;;  %s2023_s15 = sphi %s2063_s15, %s2359_s15   ;;  %s2019_s14 = sphi %s2061_s14, %s2358_s14   ;;  %s2015_s13 = sphi %s2059_s13, %s2357_s13   ;;  %s2011_s12 = sphi %s2057_s12, %s2356_s12  }
   0x5   : > { %s28_s20 = sadd.s32 1, %s2027_s16  ;;  %s115_s21 = sadd.s32 1, %s2019_s14 }
   0x6   : > { %p30_p0 = scmp.ge.s32.totalorder %s28_s20, 16  ;;  %p125_p1 = scmp.ne.s32.totalorder %s2019_s14, %s2015_s13 }
   0x7   : > { %p126_p2 = scmp.eq.s32.totalorder %s1355_s18, 15  ;;  %p131_p3 = scmp.ne.s32.totalorder %s2015_s13, %s2011_s12 }
   0x8   : > { %s2362_s20 = smov (%p30_p0, %s28_s20), 0  ;;  %p132_p5 = scmp.eq.s32.totalorder %s1356_s19, 15 }
   0x9   : > { %p2097_p4 = por %p126_p2, %p125_p1  ;;  %s110_s23 = ssub.s32 %s2027_s16, %s2362_s20 }
   0xa   : > { %p1361_p6 = scmp.ge.s32.totalorder %s2031_s17, 1  ;;  %p113_p7 = scmp.eq.s32.totalorder %s110_s23, 0 }
   0xb   : > { %p2104_p8 = por %p132_p5, %p131_p3  ;;  %p172_p9 = scmp.lt.s32.totalorder %s2031_s17, 17 }
   0xc   : > { %s2110_s25 = scalar_select %p113_p7, %s2019_s14, %s115_s21  }
   0xd   : > { %p173_p10 = pnand %p1361_p6, %p172_p9 }
   0xe   : > { %s1363_s28 = sshll.u32 (!%p173_p10), %s2023_s15, 6  ;;  %s200_s10 = sand.u32 (!%p173_p10), 1, %s2015_s13  }
   0xf   : > { %176 = sbr.rel (%p173_p10) target bundleno = 308 (0x134), region = 32  ;;  %p204_p11 = scmp.lt.s32.totalorder (!%p173_p10), %s1363_s28, 1023 }
  0x10   : > { %s1362_s11 = sshll.u32 (!%p173_p10), %s200_s10, 8  ;;  %s1565_s19 = sshll.u32 (!%p173_p10), %s2023_s15, 12 }
  0x11   : > { %s2206_s18 = scalar_lea.vmem (!%p173_p10), [#allocation2], %s1362_s11  ;;  %s2295_s27 = scalar_lea.hbm (!%p173_p10), %s2353_s3, %s1565_s19 }
  0x12   : > { %s1256_s21 = sshll.u32 (!%p173_p10), %s2206_s18, 4  ;;  %s2305_s15 = scalar_lea.sflag (!%p173_p10), [#allocation3], %s200_s10  ;;  %s2297_s21 = int_to_ptr.vmem [resolvable:$true] %s1256_s21 }
  0x13   : > { %s2034_s29 = smov (!%p173_p10), [#allocation2]  }
  0x14   : > { %v1921_v0 = vld [vmem:[%s2351_s1 + $0x8] sm:$0x3f]   ;;  %vm561_vm0 = vcmask 1044480   ;;  %vm562_vm1 = vcmask 1045504   ;;  %v2033_v1 = vmov 65535   ;;  %v1922_v5 = vld [vmem:[%s2351_s1] sm:$0xff]  }
  0x15   : > { %v563_v2 = vsel %vm561_vm0, 4294967295, %v2033_v1  ;;  %s2364_s28 = smov (!%p204_p11, %s1363_s28), 1023  ;;  %vm464_vm2 = vcmask 220160   ;;  %v2191_v38 = vld [vmem:[%s2352_s2] ss:$0 sm:$0xff]  ;;  %s1959_s30 = sshll.u32 %s2034_s29, 4  ;;  %s1960_s30 = int_to_ptr.vmem [resolvable:$false] %s1959_s30 }
  0x16   : > { %v564_v3 = vsel %vm562_vm1, %v563_v2, 0  ;;  %s1364_s4 = sshll.u32 %s2364_s28, 2  ;;  %s1955_s28 = scalar_lea.vmem %s2297_s21, 4096 }
  0x17   : > { %v566_v4 = vand.u32 %v1921_v0, %v564_v3  ;;  %s2122_s7 = scalar_lea.vmem %s2350_s0, %s1364_s4  ;;  %p1956_p12 = scmp.ne.s32.totalorder %s2297_s21, %s1955_s28 }
  0x18   : > { %v1923_v6 = vld [vmem:[%s2122_s7] sm:$0xff]   ;;  %v1925_v8 = vld [vmem:[%s2122_s7 + $0x8] sm:$0xff]   ;;  %v1927_v10 = vld [vmem:[%s2122_s7 + $0x10] sm:$0xff]   ;;  %s1961_s4 = scalar_lea.vmem %s1960_s30, 8192  ;;  %p1962_p1 = scmp.lt.s32.totalorder %s2297_s21, %s1960_s30 }
  0x19   : > { %1791 = vmatprep.subr.bf16.mxu0 %v566_v4  ;;  %1859 = vmatprep.subr.bf16.mxu1 %v566_v4  ;;  %v1924_v7 = vld [vmem:[%s2122_s7 + $0x80] sm:$0xff]   ;;  %v1926_v9 = vld [vmem:[%s2122_s7 + $0x88] sm:$0xff]   ;;  %v1928_v11 = vld [vmem:[%s2122_s7 + $0x90] sm:$0xff]   ;;  %p1957_p13 = pnand %p1956_p12, %p2097_p4  ;;  %p1963_p2 = scmp.lt.s32.totalorder %s1961_s4, %s1955_s28 }
  0x1a   : > { %1792 = vmatpush3.bf16.msra.mxu0 %v566_v4  ;;  %1861 = vmatpush3.bf16.msra.mxu1 %v566_v4  ;;  %v1929_v12 = vld [vmem:[%s2122_s7 + $0x18] sm:$0xff]   ;;  %v1931_v14 = vld [vmem:[%s2122_s7 + $0x20] sm:$0xff]   ;;  %v1933_v16 = vld [vmem:[%s2122_s7 + $0x28] sm:$0xff]  }
  0x1b   : > { %1793 = vmatprep.subr.bf16.mxu0 %v1922_v5  ;;  %1860 = vmatprep.subr.bf16.mxu1 %v1922_v5  ;;  %v1930_v13 = vld [vmem:[%s2122_s7 + $0x98] sm:$0xff]   ;;  %v1932_v15 = vld [vmem:[%s2122_s7 + $0xa0] sm:$0xff]   ;;  %v1934_v17 = vld [vmem:[%s2122_s7 + $0xa8] sm:$0xff]   ;;  %p1958_p0 = pneg %p1957_p13  ;;  %p1964_p3 = por %p1963_p2, %p1962_p1 }
  0x1c   : > { %1795 = vmatprep.mubr.msk.bf16.mxu0 %vm464_vm2, %v1923_v6  ;;  %1827 = vmatprep.mubr.msk.bf16.mxu1 %vm464_vm2, %v1924_v7  ;;  %v1935_v18 = vld [vmem:[%s2122_s7 + $0x30] sm:$0xff]   ;;  %v1937_v20 = vld [vmem:[%s2122_s7 + $0x38] sm:$0xff]   ;;  %v1939_v22 = vld [vmem:[%s2122_s7 + $0x40] sm:$0xff]  }
  0x1d   : > { %v1936_v19 = vld [vmem:[%s2122_s7 + $0xb0] sm:$0xff]   ;;  %v1938_v21 = vld [vmem:[%s2122_s7 + $0xb8] sm:$0xff]   ;;  %v1940_v23 = vld [vmem:[%s2122_s7 + $0xc0] sm:$0xff]   ;;  %p1965_p5 = pnand %p1964_p3, %p1958_p0 }
  0x1e   : > { %1794 = vmatpush3.bf16.msra.mxu0 %v1922_v5  ;;  %1862 = vmatpush3.bf16.msra.mxu1 %v1922_v5  ;;  %v1941_v24 = vld [vmem:[%s2122_s7 + $0x48] sm:$0xff]   ;;  %v1943_v26 = vld [vmem:[%s2122_s7 + $0x50] sm:$0xff]   ;;  %v1945_v28 = vld [vmem:[%s2122_s7 + $0x58] sm:$0xff]  }
  0x1f   : > { %v1942_v25 = vld [vmem:[%s2122_s7 + $0xc8] sm:$0xff]   ;;  %v1944_v27 = vld [vmem:[%s2122_s7 + $0xd0] sm:$0xff]   ;;  %v1946_v29 = vld [vmem:[%s2122_s7 + $0xd8] sm:$0xff]  }
  0x20   : > { %v1947_v30 = vld [vmem:[%s2122_s7 + $0x60] sm:$0xff]   ;;  %v1949_v32 = vld [vmem:[%s2122_s7 + $0x68] sm:$0xff]   ;;  %v1951_v34 = vld [vmem:[%s2122_s7 + $0x70] sm:$0xff]  }
  0x21   : > { %1796 = vmatmul.mubr.msk.bf16.vlgmr.msra.gmra.mxu0 %vm464_vm2, %v1925_v8  ;;  %1828 = vmatmul.mubr.msk.bf16.vlgmr.msra.gmra.mxu1 %vm464_vm2, %v1926_v9  ;;  %v1948_v31 = vld [vmem:[%s2122_s7 + $0xe0] sm:$0xff]   ;;  %v1950_v33 = vld [vmem:[%s2122_s7 + $0xe8] sm:$0xff]   ;;  %v1952_v35 = vld [vmem:[%s2122_s7 + $0xf0] sm:$0xff]  }
  0x22   : > { %1799 = vmatprep.mubr.msk.bf16.mxu0 %vm464_vm2, %v1927_v10  ;;  %1831 = vmatprep.mubr.msk.bf16.mxu1 %vm464_vm2, %v1928_v11  ;;  %v1953_v36 = vld [vmem:[%s2122_s7 + $0x78] sm:$0xff]  }
  0x23   : > { %v1954_v37 = vld [vmem:[%s2122_s7 + $0xf8] sm:$0xff]  }
  0x29   : > { %1800 = vmatmul.mubr.msk.bf16.gmra.mxu0 %vm464_vm2, %v1929_v12  ;;  %1832 = vmatmul.mubr.msk.bf16.gmra.mxu1 %vm464_vm2, %v1930_v13 }
  0x2a   : > { %1803 = vmatprep.mubr.msk.bf16.mxu0 %vm464_vm2, %v1931_v14  ;;  %1835 = vmatprep.mubr.msk.bf16.mxu1 %vm464_vm2, %v1932_v15 }
  0x31   : > { %1804 = vmatmul.mubr.msk.bf16.gmra.mxu0 %vm464_vm2, %v1933_v16  ;;  %1836 = vmatmul.mubr.msk.bf16.gmra.mxu1 %vm464_vm2, %v1934_v17 }
  0x32   : > { %1807 = vmatprep.mubr.msk.bf16.mxu0 %vm464_vm2, %v1935_v18  ;;  %1839 = vmatprep.mubr.msk.bf16.mxu1 %vm464_vm2, %v1936_v19 }
  0x39   : > { %1808 = vmatmul.mubr.msk.bf16.gmra.mxu0 %vm464_vm2, %v1937_v20  ;;  %1840 = vmatmul.mubr.msk.bf16.gmra.mxu1 %vm464_vm2, %v1938_v21 }
  0x3a   : > { %1811 = vmatprep.mubr.msk.bf16.mxu0 %vm464_vm2, %v1939_v22  ;;  %1843 = vmatprep.mubr.msk.bf16.mxu1 %vm464_vm2, %v1940_v23 }
  0x41   : > { %1812 = vmatmul.mubr.msk.bf16.gmra.mxu0 %vm464_vm2, %v1941_v24  ;;  %1844 = vmatmul.mubr.msk.bf16.gmra.mxu1 %vm464_vm2, %v1942_v25 }
  0x42   : > { %1815 = vmatprep.mubr.msk.bf16.mxu0 %vm464_vm2, %v1943_v26  ;;  %1847 = vmatprep.mubr.msk.bf16.mxu1 %vm464_vm2, %v1944_v27 }
  0x49   : > { %1816 = vmatmul.mubr.msk.bf16.gmra.mxu0 %vm464_vm2, %v1945_v28  ;;  %1848 = vmatmul.mubr.msk.bf16.gmra.mxu1 %vm464_vm2, %v1946_v29 }
  0x4a   : > { %1819 = vmatprep.mubr.msk.bf16.mxu0 %vm464_vm2, %v1947_v30  ;;  %1851 = vmatprep.mubr.msk.bf16.mxu1 %vm464_vm2, %v1948_v31 }
  0x51   : > { %1820 = vmatmul.mubr.msk.bf16.gmra.mxu0 %vm464_vm2, %v1949_v32  ;;  %1852 = vmatmul.mubr.msk.bf16.gmra.mxu1 %vm464_vm2, %v1950_v33 }
  0x52   : > { %1823 = vmatprep.mubr.msk.bf16.mxu0 %vm464_vm2, %v1951_v34  ;;  %1855 = vmatprep.mubr.msk.bf16.mxu1 %vm464_vm2, %v1952_v35 }
  0x59   : > { %1824 = vmatmul.mubr.msk.bf16.gmra.mxu0 %vm464_vm2, %v1953_v36  ;;  %1856 = vmatmul.mubr.msk.bf16.gmra.mxu1 %vm464_vm2, %v1954_v37 }
  0xe1   : > { %v1797_v39 = vpop.f32.mrf.mxu0  ;;  %v1829_v40 = vpop.f32.mrf.mxu1 }
  0xe2   : > { %v611_v41 = vadd.f32 %v1797_v39, %v2191_v38  ;;  %v739_v42 = vadd.f32 %v1829_v40, %v2191_v38 }
  0xe3   : > { %v602_v43 = vpop.f32.mrf.mxu0  ;;  %v730_v44 = vpop.f32.mrf.mxu1 }
  0xe4   : > { %v603_v45 = vadd.f32 %v2191_v38, %v602_v43  ;;  %v731_v46 = vadd.f32 %v2191_v38, %v730_v44  ;;  %v859_v51 = vmax.f32 %v611_v41, 0.0  ;;  %v891_v52 = vmax.f32 %v739_v42, 0.0 }
  0xe5   : > { %v1798_v47 = vpop.f32.mrf.mxu0  ;;  %v1830_v48 = vpop.f32.mrf.mxu1 }
  0xe6   : > { %v614_v49 = vadd.f32 %v1798_v47, %v2191_v38  ;;  %v742_v50 = vadd.f32 %v1830_v48, %v2191_v38  ;;  %v857_v59 = vmax.f32 %v603_v45, 0.0  ;;  %v889_v60 = vmax.f32 %v731_v46, 0.0 }
  0xe7   : > { %v605_v53 = vpop.f32.mrf.mxu0  ;;  %v733_v54 = vpop.f32.mrf.mxu1 }
  0xe8   : > { %v860_v55 = vmax.f32 %v614_v49, 0.0  ;;  %v892_v56 = vmax.f32 %v742_v50, 0.0  ;;  %v606_v57 = vadd.f32 %v2191_v38, %v605_v53  ;;  %v734_v58 = vadd.f32 %v2191_v38, %v733_v54 }
  0xe9   : > { %v1801_v61 = vpop.f32.mrf.mxu0  ;;  %v1833_v62 = vpop.f32.mrf.mxu1 }
  0xea   : > { %v1574_v63 = vpack.c.bf16 %v860_v55, %v859_v51  ;;  %v1654_v0 = vpack.c.bf16 %v892_v56, %v891_v52  ;;  %v858_v1 = vmax.f32 %v606_v57, 0.0  ;;  %v890_v2 = vmax.f32 %v734_v58, 0.0 }
  0xeb   : > { %v627_v3 = vadd.f32 %v1801_v61, %v2191_v38  ;;  %v755_v4 = vadd.f32 %v1833_v62, %v2191_v38  ;;  %v618_v5 = vpop.f32.mrf.mxu0  ;;  %v746_v6 = vpop.f32.mrf.mxu1 }
  0xec   : > { %1726 = vst [vmem:[%s2206_s18 + $0x8] sm:$0xff] %v1574_v63   ;;  %1742 = vst [vmem:[%s2206_s18 + $0x88] sm:$0xff] %v1654_v0   ;;  %v1569_v7 = vpack.c.bf16 %v858_v1, %v857_v59  ;;  %v1649_v8 = vpack.c.bf16 %v890_v2, %v889_v60  ;;  %v619_v9 = vadd.f32 %v2191_v38, %v618_v5 }
  0xed   : > { %v747_v10 = vadd.f32 %v2191_v38, %v746_v6  ;;  %v1802_v11 = vpop.f32.mrf.mxu0  ;;  %v1834_v12 = vpop.f32.mrf.mxu1  ;;  %v863_v15 = vmax.f32 %v627_v3, 0.0  ;;  %v895_v16 = vmax.f32 %v755_v4, 0.0 }
  0xee   : > { %1570 = vst [vmem:[%s2206_s18] sm:$0xff] %v1569_v7   ;;  %1741 = vst [vmem:[%s2206_s18 + $0x80] sm:$0xff] %v1649_v8   ;;  %v630_v13 = vadd.f32 %v1802_v11, %v2191_v38  ;;  %v758_v14 = vadd.f32 %v1834_v12, %v2191_v38  ;;  %v861_v23 = vmax.f32 %v619_v9, 0.0 }
  0xef   : > { %v621_v17 = vpop.f32.mrf.mxu0  ;;  %v749_v18 = vpop.f32.mrf.mxu1  ;;  %v893_v24 = vmax.f32 %v747_v10, 0.0 }
  0xf0   : > { %v864_v19 = vmax.f32 %v630_v13, 0.0  ;;  %v896_v20 = vmax.f32 %v758_v14, 0.0  ;;  %v622_v21 = vadd.f32 %v2191_v38, %v621_v17  ;;  %v750_v22 = vadd.f32 %v2191_v38, %v749_v18 }
  0xf1   : > { %v1805_v25 = vpop.f32.mrf.mxu0  ;;  %v1837_v26 = vpop.f32.mrf.mxu1 }
  0xf2   : > { %v1584_v27 = vpack.c.bf16 %v864_v19, %v863_v15  ;;  %v1664_v28 = vpack.c.bf16 %v896_v20, %v895_v16  ;;  %v862_v29 = vmax.f32 %v622_v21, 0.0  ;;  %v894_v30 = vmax.f32 %v750_v22, 0.0 }
  0xf3   : > { %v643_v31 = vadd.f32 %v1805_v25, %v2191_v38  ;;  %v771_v32 = vadd.f32 %v1837_v26, %v2191_v38  ;;  %v634_v33 = vpop.f32.mrf.mxu0  ;;  %v762_v34 = vpop.f32.mrf.mxu1 }
  0xf4   : > { %1728 = vst [vmem:[%s2206_s18 + $0x18] sm:$0xff] %v1584_v27   ;;  %1744 = vst [vmem:[%s2206_s18 + $0x98] sm:$0xff] %v1664_v28   ;;  %v1579_v35 = vpack.c.bf16 %v862_v29, %v861_v23  ;;  %v1659_v36 = vpack.c.bf16 %v894_v30, %v893_v24  ;;  %v635_v37 = vadd.f32 %v2191_v38, %v634_v33 }
  0xf5   : > { %v763_v39 = vadd.f32 %v2191_v38, %v762_v34  ;;  %v1806_v40 = vpop.f32.mrf.mxu0  ;;  %v1838_v41 = vpop.f32.mrf.mxu1  ;;  %v867_v44 = vmax.f32 %v643_v31, 0.0  ;;  %v899_v45 = vmax.f32 %v771_v32, 0.0 }
  0xf6   : > { %1727 = vst [vmem:[%s2206_s18 + $0x10] sm:$0xff] %v1579_v35   ;;  %1743 = vst [vmem:[%s2206_s18 + $0x90] sm:$0xff] %v1659_v36   ;;  %v646_v42 = vadd.f32 %v1806_v40, %v2191_v38  ;;  %v774_v43 = vadd.f32 %v1838_v41, %v2191_v38  ;;  %v865_v52 = vmax.f32 %v635_v37, 0.0 }
  0xf7   : > { %v637_v46 = vpop.f32.mrf.mxu0  ;;  %v765_v47 = vpop.f32.mrf.mxu1  ;;  %v897_v53 = vmax.f32 %v763_v39, 0.0 }
  0xf8   : > { %v868_v48 = vmax.f32 %v646_v42, 0.0  ;;  %v900_v49 = vmax.f32 %v774_v43, 0.0  ;;  %v638_v50 = vadd.f32 %v2191_v38, %v637_v46  ;;  %v766_v51 = vadd.f32 %v2191_v38, %v765_v47 }
  0xf9   : > { %v1809_v54 = vpop.f32.mrf.mxu0  ;;  %v1841_v55 = vpop.f32.mrf.mxu1 }
  0xfa   : > { %v1594_v56 = vpack.c.bf16 %v868_v48, %v867_v44  ;;  %v1674_v57 = vpack.c.bf16 %v900_v49, %v899_v45  ;;  %v866_v58 = vmax.f32 %v638_v50, 0.0  ;;  %v898_v59 = vmax.f32 %v766_v51, 0.0 }
  0xfb   : > { %v659_v60 = vadd.f32 %v1809_v54, %v2191_v38  ;;  %v787_v61 = vadd.f32 %v1841_v55, %v2191_v38  ;;  %v650_v62 = vpop.f32.mrf.mxu0  ;;  %v778_v63 = vpop.f32.mrf.mxu1 }
  0xfc   : > { %1730 = vst [vmem:[%s2206_s18 + $0x28] sm:$0xff] %v1594_v56   ;;  %1746 = vst [vmem:[%s2206_s18 + $0xa8] sm:$0xff] %v1674_v57   ;;  %v1589_v0 = vpack.c.bf16 %v866_v58, %v865_v52  ;;  %v1669_v1 = vpack.c.bf16 %v898_v59, %v897_v53  ;;  %v651_v2 = vadd.f32 %v2191_v38, %v650_v62 }
  0xfd   : > { %v779_v3 = vadd.f32 %v2191_v38, %v778_v63  ;;  %v1810_v4 = vpop.f32.mrf.mxu0  ;;  %v1842_v5 = vpop.f32.mrf.mxu1  ;;  %v871_v8 = vmax.f32 %v659_v60, 0.0  ;;  %v903_v9 = vmax.f32 %v787_v61, 0.0 }
  0xfe   : > { %1729 = vst [vmem:[%s2206_s18 + $0x20] sm:$0xff] %v1589_v0   ;;  %1745 = vst [vmem:[%s2206_s18 + $0xa0] sm:$0xff] %v1669_v1   ;;  %v662_v6 = vadd.f32 %v1810_v4, %v2191_v38  ;;  %v790_v7 = vadd.f32 %v1842_v5, %v2191_v38  ;;  %v869_v16 = vmax.f32 %v651_v2, 0.0 }
  0xff   : > { %v653_v10 = vpop.f32.mrf.mxu0  ;;  %v781_v11 = vpop.f32.mrf.mxu1  ;;  %v901_v17 = vmax.f32 %v779_v3, 0.0 }
 0x100   : > { %v872_v12 = vmax.f32 %v662_v6, 0.0  ;;  %v904_v13 = vmax.f32 %v790_v7, 0.0  ;;  %v654_v14 = vadd.f32 %v2191_v38, %v653_v10  ;;  %v782_v15 = vadd.f32 %v2191_v38, %v781_v11 }
 0x101   : > { %v1813_v18 = vpop.f32.mrf.mxu0  ;;  %v1845_v19 = vpop.f32.mrf.mxu1 }
 0x102   : > { %v1604_v20 = vpack.c.bf16 %v872_v12, %v871_v8  ;;  %v1684_v21 = vpack.c.bf16 %v904_v13, %v903_v9  ;;  %v870_v22 = vmax.f32 %v654_v14, 0.0  ;;  %v902_v23 = vmax.f32 %v782_v15, 0.0 }
 0x103   : > { %v675_v24 = vadd.f32 %v1813_v18, %v2191_v38  ;;  %v803_v25 = vadd.f32 %v1845_v19, %v2191_v38  ;;  %v666_v26 = vpop.f32.mrf.mxu0  ;;  %v794_v27 = vpop.f32.mrf.mxu1 }
 0x104   : > { %1732 = vst [vmem:[%s2206_s18 + $0x38] sm:$0xff] %v1604_v20   ;;  %1748 = vst [vmem:[%s2206_s18 + $0xb8] sm:$0xff] %v1684_v21   ;;  %v1599_v28 = vpack.c.bf16 %v870_v22, %v869_v16  ;;  %v1679_v29 = vpack.c.bf16 %v902_v23, %v901_v17  ;;  %v667_v30 = vadd.f32 %v2191_v38, %v666_v26 }
 0x105   : > { %v795_v31 = vadd.f32 %v2191_v38, %v794_v27  ;;  %v1814_v32 = vpop.f32.mrf.mxu0  ;;  %v1846_v33 = vpop.f32.mrf.mxu1  ;;  %v875_v36 = vmax.f32 %v675_v24, 0.0  ;;  %v907_v37 = vmax.f32 %v803_v25, 0.0 }
 0x106   : > { %1731 = vst [vmem:[%s2206_s18 + $0x30] sm:$0xff] %v1599_v28   ;;  %1747 = vst [vmem:[%s2206_s18 + $0xb0] sm:$0xff] %v1679_v29   ;;  %v678_v34 = vadd.f32 %v1814_v32, %v2191_v38  ;;  %v806_v35 = vadd.f32 %v1846_v33, %v2191_v38  ;;  %v873_v45 = vmax.f32 %v667_v30, 0.0 }
 0x107   : > { %v669_v39 = vpop.f32.mrf.mxu0  ;;  %v797_v40 = vpop.f32.mrf.mxu1  ;;  %v905_v46 = vmax.f32 %v795_v31, 0.0 }
 0x108   : > { %v876_v41 = vmax.f32 %v678_v34, 0.0  ;;  %v908_v42 = vmax.f32 %v806_v35, 0.0  ;;  %v670_v43 = vadd.f32 %v2191_v38, %v669_v39  ;;  %v798_v44 = vadd.f32 %v2191_v38, %v797_v40 }
 0x109   : > { %v1817_v47 = vpop.f32.mrf.mxu0  ;;  %v1849_v48 = vpop.f32.mrf.mxu1 }
 0x10a   : > { %v1614_v49 = vpack.c.bf16 %v876_v41, %v875_v36  ;;  %v1694_v50 = vpack.c.bf16 %v908_v42, %v907_v37  ;;  %v874_v51 = vmax.f32 %v670_v43, 0.0  ;;  %v906_v52 = vmax.f32 %v798_v44, 0.0 }
 0x10b   : > { %v691_v53 = vadd.f32 %v1817_v47, %v2191_v38  ;;  %v819_v54 = vadd.f32 %v1849_v48, %v2191_v38  ;;  %v682_v55 = vpop.f32.mrf.mxu0  ;;  %v810_v56 = vpop.f32.mrf.mxu1 }
 0x10c   : > { %1734 = vst [vmem:[%s2206_s18 + $0x48] sm:$0xff] %v1614_v49   ;;  %1750 = vst [vmem:[%s2206_s18 + $0xc8] sm:$0xff] %v1694_v50   ;;  %v1609_v57 = vpack.c.bf16 %v874_v51, %v873_v45  ;;  %v1689_v58 = vpack.c.bf16 %v906_v52, %v905_v46  ;;  %v683_v59 = vadd.f32 %v2191_v38, %v682_v55 }
 0x10d   : > { %v811_v60 = vadd.f32 %v2191_v38, %v810_v56  ;;  %v1818_v61 = vpop.f32.mrf.mxu0  ;;  %v1850_v62 = vpop.f32.mrf.mxu1  ;;  %v879_v1 = vmax.f32 %v691_v53, 0.0  ;;  %v911_v2 = vmax.f32 %v819_v54, 0.0 }
 0x10e   : > { %1733 = vst [vmem:[%s2206_s18 + $0x40] sm:$0xff] %v1609_v57   ;;  %1749 = vst [vmem:[%s2206_s18 + $0xc0] sm:$0xff] %v1689_v58   ;;  %v694_v63 = vadd.f32 %v1818_v61, %v2191_v38  ;;  %v822_v0 = vadd.f32 %v1850_v62, %v2191_v38  ;;  %v877_v9 = vmax.f32 %v683_v59, 0.0 }
 0x10f   : > { %v685_v3 = vpop.f32.mrf.mxu0  ;;  %v813_v4 = vpop.f32.mrf.mxu1  ;;  %v909_v10 = vmax.f32 %v811_v60, 0.0 }
 0x110   : > { %v880_v5 = vmax.f32 %v694_v63, 0.0  ;;  %v912_v6 = vmax.f32 %v822_v0, 0.0  ;;  %v686_v7 = vadd.f32 %v2191_v38, %v685_v3  ;;  %v814_v8 = vadd.f32 %v2191_v38, %v813_v4 }
 0x111   : > { %v1821_v11 = vpop.f32.mrf.mxu0  ;;  %v1853_v12 = vpop.f32.mrf.mxu1 }
 0x112   : > { %v1624_v13 = vpack.c.bf16 %v880_v5, %v879_v1  ;;  %v1704_v14 = vpack.c.bf16 %v912_v6, %v911_v2  ;;  %v878_v15 = vmax.f32 %v686_v7, 0.0  ;;  %v910_v16 = vmax.f32 %v814_v8, 0.0 }
 0x113   : > { %v707_v17 = vadd.f32 %v1821_v11, %v2191_v38  ;;  %v835_v18 = vadd.f32 %v1853_v12, %v2191_v38  ;;  %v698_v19 = vpop.f32.mrf.mxu0  ;;  %v826_v20 = vpop.f32.mrf.mxu1 }
 0x114   : > { %1736 = vst [vmem:[%s2206_s18 + $0x58] sm:$0xff] %v1624_v13   ;;  %1752 = vst [vmem:[%s2206_s18 + $0xd8] sm:$0xff] %v1704_v14   ;;  %v1619_v21 = vpack.c.bf16 %v878_v15, %v877_v9  ;;  %v1699_v22 = vpack.c.bf16 %v910_v16, %v909_v10  ;;  %v699_v23 = vadd.f32 %v2191_v38, %v698_v19 }
 0x115   : > { %v827_v24 = vadd.f32 %v2191_v38, %v826_v20  ;;  %v1822_v25 = vpop.f32.mrf.mxu0  ;;  %v1854_v26 = vpop.f32.mrf.mxu1  ;;  %v883_v29 = vmax.f32 %v707_v17, 0.0  ;;  %v915_v30 = vmax.f32 %v835_v18, 0.0 }
 0x116   : > { %1735 = vst [vmem:[%s2206_s18 + $0x50] sm:$0xff] %v1619_v21   ;;  %1751 = vst [vmem:[%s2206_s18 + $0xd0] sm:$0xff] %v1699_v22   ;;  %v710_v27 = vadd.f32 %v1822_v25, %v2191_v38  ;;  %v838_v28 = vadd.f32 %v1854_v26, %v2191_v38  ;;  %v881_v37 = vmax.f32 %v699_v23, 0.0 }
 0x117   : > { %v701_v31 = vpop.f32.mrf.mxu0  ;;  %v829_v32 = vpop.f32.mrf.mxu1  ;;  %v913_v39 = vmax.f32 %v827_v24, 0.0 }
 0x118   : > { %v884_v33 = vmax.f32 %v710_v27, 0.0  ;;  %v916_v34 = vmax.f32 %v838_v28, 0.0  ;;  %v702_v35 = vadd.f32 %v2191_v38, %v701_v31  ;;  %v830_v36 = vadd.f32 %v2191_v38, %v829_v32 }
 0x119   : > { %v1825_v40 = vpop.f32.mrf.mxu0  ;;  %v1857_v41 = vpop.f32.mrf.mxu1 }
 0x11a   : > { %v1634_v42 = vpack.c.bf16 %v884_v33, %v883_v29  ;;  %v1714_v43 = vpack.c.bf16 %v916_v34, %v915_v30  ;;  %v882_v44 = vmax.f32 %v702_v35, 0.0  ;;  %v914_v45 = vmax.f32 %v830_v36, 0.0 }
 0x11b   : > { %v723_v46 = vadd.f32 %v1825_v40, %v2191_v38  ;;  %v851_v47 = vadd.f32 %v1857_v41, %v2191_v38  ;;  %v714_v48 = vpop.f32.mrf.mxu0  ;;  %v842_v49 = vpop.f32.mrf.mxu1 }
 0x11c   : > { %1738 = vst [vmem:[%s2206_s18 + $0x68] sm:$0xff] %v1634_v42   ;;  %1754 = vst [vmem:[%s2206_s18 + $0xe8] sm:$0xff] %v1714_v43   ;;  %v1629_v50 = vpack.c.bf16 %v882_v44, %v881_v37  ;;  %v1709_v51 = vpack.c.bf16 %v914_v45, %v913_v39  ;;  %v715_v52 = vadd.f32 %v2191_v38, %v714_v48 }
 0x11d   : > { %v843_v53 = vadd.f32 %v2191_v38, %v842_v49  ;;  %v1826_v54 = vpop.f32.mrf.mxu0  ;;  %v1858_v55 = vpop.f32.mrf.mxu1  ;;  %v887_v58 = vmax.f32 %v723_v46, 0.0  ;;  %v919_v59 = vmax.f32 %v851_v47, 0.0 }
 0x11e   : > { %1737 = vst [vmem:[%s2206_s18 + $0x60] sm:$0xff] %v1629_v50   ;;  %1753 = vst [vmem:[%s2206_s18 + $0xe0] sm:$0xff] %v1709_v51   ;;  %v726_v56 = vadd.f32 %v1826_v54, %v2191_v38  ;;  %v854_v57 = vadd.f32 %v1858_v55, %v2191_v38  ;;  %v885_v2 = vmax.f32 %v715_v52, 0.0 }
 0x11f   : > { %v717_v60 = vpop.f32.mrf.mxu0  ;;  %v845_v61 = vpop.f32.mrf.mxu1  ;;  %v917_v3 = vmax.f32 %v843_v53, 0.0 }
 0x120   : > { %v888_v62 = vmax.f32 %v726_v56, 0.0  ;;  %v920_v63 = vmax.f32 %v854_v57, 0.0  ;;  %v718_v0 = vadd.f32 %v2191_v38, %v717_v60  ;;  %v846_v1 = vadd.f32 %v2191_v38, %v845_v61 }
 0x122   : > { %v1644_v4 = vpack.c.bf16 %v888_v62, %v887_v58  ;;  %v1724_v5 = vpack.c.bf16 %v920_v63, %v919_v59  ;;  %v886_v6 = vmax.f32 %v718_v0, 0.0  ;;  %v918_v7 = vmax.f32 %v846_v1, 0.0 }
 0x124   : > { %1740 = vst [vmem:[%s2206_s18 + $0x78] sm:$0xff] %v1644_v4   ;;  %1756 = vst [vmem:[%s2206_s18 + $0xf8] sm:$0xff] %v1724_v5   ;;  %v1639_v38 = vpack.c.bf16 %v886_v6, %v885_v2  ;;  %v1719_v8 = vpack.c.bf16 %v918_v7, %v917_v3 }
 0x126   : > { %1739 = vst [vmem:[%s2206_s18 + $0x70] sm:$0xff] %v1639_v38   ;;  %1755 = vst [vmem:[%s2206_s18 + $0xf0] sm:$0xff] %v1719_v8  }
 0x127   : > { %1968 = shalt.err (!%p1965_p5)
}
 0x128   : > { %s1969_s5 = scalar_lea.hbm %s2295_s27, 4096  ;;  %s1973_s8 = scalar_lea.hbm %s2353_s3, 65536 }
 0x129   : > { %p1970_p6 = scmp.ne.s32.totalorder %s2295_s27, %s1969_s5  ;;  %p1974_p10 = scmp.lt.s32.totalorder %s2295_s27, %s2353_s3 }
 0x12a   : > { %p1975_p11 = scmp.lt.s32.totalorder %s1973_s8, %s1969_s5 }
 0x12b   : > { %p1971_p7 = pnand %p1970_p6, %p2097_p4 }
 0x12c   : > { %p1976_p12 = por %p1975_p11, %p1974_p10 }
 0x12d   : > { %p1972_p9 = pneg %p1971_p7 }
 0x12f   : > { %p1977_p13 = pnand %p1976_p12, %p1972_p9 }
 0x131   : > { %1980 = shalt.err (!%p1977_p13)
}
 0x132   : > { %s2035_s11 = smov 64   ;;  %s2036_s18 = smov 4  }
 0x133   : > { %1863 = dma.vmem_to_hbm [thread:$0]  (%p2097_p4), %s2297_s21, 4096, %s2295_s27, %s2305_s15, %s2035_s11, %s2035_s11, %s2036_s18  }
 0x134 PF: > { %p1869_p0 = scmp.ge.s32.totalorder %s2031_s17, 2  ;;  %s1271_s19 = sand.u32 1, %s2011_s12  }
 0x135   : > { %s1272_s23 = scalar_lea.sflag [#allocation3], %s1271_s19 }
 0x136   : > { %p1866_p1 = pnand %p1869_p0, %p2104_p8 }
 0x138   : > { %p1867_p2 = pneg %p1866_p1 }
 0x13a   : > { %2006 = dma.done.wait (%p1867_p2), %s1272_s23, 4096  }
 0x13b   : > { %2008 = vsyncadd (%p1867_p2), %s1272_s23, 4294963200  ;;  %s16_s17 = sadd.s32 1, %s2031_s17   ;;  %s2356_s12 = smov %s2015_s13 }
 0x13c   : > { %p13_p3 = scmp.ge.s32.totalorder %s16_s17, 18   ;;  %s2357_s13 = smov %s2019_s14 }
 0x13d   : > { %s2358_s14 = smov %s2110_s25  ;;  %s2359_s15 = smov %s2027_s16 }
 0x13e   : > { %s2360_s16 = smov %s2362_s20  ;;  %15 = sbr.rel (!%p13_p3) target bundleno = 4 (0x4), region = 73 }
 0x143   :  { %1277 = vsyncpa [#allocation3], 1 }
 0x144   :  { %1279 = vsyncpa [#allocation3 + $0x1], 1 }

</bundles_post_ra>
